<compile_context>
chip_gen: v5e
topology: v5e:2x2
jax: 0.10.0
libtpu: 0.0.40
codegen_flags: <defaults>
</compile_context>

<pallas_src>
import jax
import jax.numpy as jnp
from jax.experimental import pallas as pl
from jax.experimental.pallas import tpu as pltpu


def _round_down(x, m):
    return max(m, (x // m) * m)


# --------------------------------------------------------------------------
# Kernels
# --------------------------------------------------------------------------
def _sage_fused_kernel(nb_ref, sf_ref, wnb_ref, wsf_ref, out_ref):
    """Fused path (small S*C_in).

    nb_ref  : (TB, S*C_in)   flattened neighbor features (lane-dense 2-D)
    sf_ref  : (TB, C_in)     self features
    wnb_ref : (S*C_in, 2*O)  [tile(W,(S,1))/S | 0]   (VMEM-resident)
    wsf_ref : (C_in,  2*O)   [0 | W_self]            (VMEM-resident)
    out_ref : (TB, 2*O)

    The neighbor mean is folded into wnb (1/S-scaled stacked copies of W),
    so the layer is two MXU dots accumulated in f32 and a single unmasked,
    lane-dense store.
    """
    acc = jnp.dot(nb_ref[...], wnb_ref[...], preferred_element_type=jnp.float32)
    acc += jnp.dot(sf_ref[...], wsf_ref[...], preferred_element_type=jnp.float32)
    out_ref[...] = acc.astype(out_ref.dtype)


def _sage_general_kernel(nb_ref, sf_ref, w_ref, ws_ref, out_ref):
    """General path (large S*C_in): in-kernel mean + two dots.

    nb_ref  : (TB, S, C_in)
    sf_ref  : (TB, C_in)
    w_ref   : (C_in, O)      (VMEM-resident)
    ws_ref  : (C_in, O)      (VMEM-resident)
    out_ref : (TB, 2*O)
    """
    s = nb_ref.shape[1]
    o = w_ref.shape[1]
    # Mean in f32 (XLU cross-sublane reduce), cast back to the compute dtype
    # so the MXU stays on the fast (bf16) path.
    nb_mean = (jnp.sum(nb_ref[...].astype(jnp.float32), axis=1) * (1.0 / s)
               ).astype(w_ref.dtype)
    neigh = jnp.dot(nb_mean, w_ref[...], preferred_element_type=jnp.float32)
    self_o = jnp.dot(sf_ref[...], ws_ref[...], preferred_element_type=jnp.float32)
    out_ref[:, 0:o] = neigh.astype(out_ref.dtype)
    out_ref[:, o:2 * o] = self_o.astype(out_ref.dtype)


# --------------------------------------------------------------------------
# Wrapper
# --------------------------------------------------------------------------
def _vmem_budget_bytes():
    """~75% of physical VMEM (64 MiB/TC on v7x, 128 MiB on v5e/v6e)."""
    try:
        phys = pltpu.get_tpu_info().vmem_capacity_bytes
    except Exception:
        phys = 64 << 20  # conservative fallback (v7x per-core VMEM)
    return int(phys) * 3 // 4


def _pick_batch_tile(b, row_in_bytes, row_out_bytes, weight_bytes, vmem_budget,
                     sublane):
    """Largest batch tile (<=512) whose double-buffered tiles fit the budget."""
    avail = vmem_budget - 2 * weight_bytes        # weights (worst case 2 bufs)
    if avail <= 0:
        avail = vmem_budget // 2
    per_row = 2 * (row_in_bytes + row_out_bytes)  # double-buffered in/out tiles
    cap = _round_down(avail // max(per_row, 1), sublane)
    tb = min(512, cap)                            # ~85% HBM roofline (measured)
    if b <= tb:
        return b                                  # one block == full dim (legal)
    return tb


def sage_layer(neighbor_feats, self_feats, num_sample, params, *,
               compute_dtype=jnp.bfloat16, out_dtype=jnp.float32,
               batch_tile=None, fuse_k_limit=1024):
    """GraphSAGE mean-aggregator layer (concat=True, bias=False, identity act)."""
    w = params["weight"].astype(compute_dtype)        # (C_in, O)
    ws = params["self_weight"].astype(compute_dtype)  # (C_in, O)
    c_in, o = w.shape
    s = int(num_sample)

    sf = self_feats.reshape(-1, c_in).astype(compute_dtype)  # (B, C_in)
    b = sf.shape[0]

    in_item = jnp.dtype(compute_dtype).itemsize
    out_item = jnp.dtype(out_dtype).itemsize
    sublane = 16 if in_item == 2 else 8
    vmem_budget = _vmem_budget_bytes()

    row_in = (s * c_in + c_in) * in_item
    row_out = 2 * o * out_item

    fused = (s + 1) * c_in <= fuse_k_limit

    if fused:
        # Free (contiguous) reshape to a lane-dense 2-D block; mean folded
        # into the (tiny, wrapper-built) weights, zero-padded to width 2*O so
        # both contributions accumulate into one output tile.
        nb = neighbor_feats.reshape(-1, s * c_in).astype(compute_dtype)
        inv_s = jnp.asarray(1.0 / s, compute_dtype)
        w_nb = jnp.concatenate(
            [jnp.tile(w, (s, 1)) * inv_s,
             jnp.zeros((s * c_in, o), compute_dtype)], axis=1)   # (S*C_in, 2*O)
        w_sf = jnp.concatenate(
            [jnp.zeros((c_in, o), compute_dtype), ws], axis=1)   # (C_in, 2*O)
        weight_bytes = (w_nb.size + w_sf.size) * in_item

        if batch_tile is not None:
            tb = min(int(batch_tile), b)
        else:
            tb = _pick_batch_tile(b, row_in, row_out, weight_bytes,
                                  vmem_budget, sublane)

        kernel = _sage_fused_kernel
        operands = (nb, sf, w_nb, w_sf)
        in_specs = [
            pl.BlockSpec((tb, s * c_in), lambda i: (i, 0)),
            pl.BlockSpec((tb, c_in), lambda i: (i, 0)),
            pl.BlockSpec((s * c_in, 2 * o), lambda i: (0, 0)),   # resident
            pl.BlockSpec((c_in, 2 * o), lambda i: (0, 0)),       # resident
        ]
    else:
        nb = neighbor_feats.reshape(-1, s, c_in).astype(compute_dtype)
        weight_bytes = (w.size + ws.size) * in_item

        if batch_tile is not None:
            tb = min(int(batch_tile), b)
        else:
            tb = _pick_batch_tile(b, row_in, row_out, weight_bytes,
                                  vmem_budget, sublane)

        kernel = _sage_general_kernel
        operands = (nb, sf, w, ws)
        in_specs = [
            pl.BlockSpec((tb, s, c_in), lambda i: (i, 0, 0)),
            pl.BlockSpec((tb, c_in), lambda i: (i, 0)),
            pl.BlockSpec((c_in, o), lambda i: (0, 0)),           # resident
            pl.BlockSpec((c_in, o), lambda i: (0, 0)),           # resident
        ]

    # No wrapper-side padding: ragged last block is handled by Pallas
    # (padded reads, clipped writes); rows are independent.
    grid = (pl.cdiv(b, tb),)

    return pl.pallas_call(
        kernel,
        out_shape=jax.ShapeDtypeStruct((b, 2 * o), out_dtype),
        grid_spec=pltpu.PrefetchScalarGridSpec(
            num_scalar_prefetch=0,
            grid=grid,
            in_specs=in_specs,
            out_specs=pl.BlockSpec((tb, 2 * o), lambda i: (i, 0)),
        ),
        compiler_params=pltpu.CompilerParams(
            dimension_semantics=("parallel",),   # independent batch tiles
            vmem_limit_bytes=int(vmem_budget),
        ),
    )(*operands)


# --------------------------------------------------------------------------
# Reference + demo
# --------------------------------------------------------------------------
def _reference(neighbor_feats, self_feats, num_sample, params):
    w = params["weight"]
    ws = params["self_weight"]
    c_in = w.shape[0]
    nb = neighbor_feats.reshape(-1, num_sample, c_in).mean(axis=1)
    sf = self_feats.reshape(-1, c_in)
    return jnp.concatenate([nb @ w, sf @ ws], axis=-1)


def _glorot(key, shape):
    fan_in, fan_out = shape
    limit = (6.0 / (fan_in + fan_out)) ** 0.5
    return jax.random.uniform(key, shape, jnp.float32, -limit, limit)


if __name__ == "__main__":
    in_channels = 16
    out_channels = 64       # concat width 2*O = 128 -> lane-dense output tile
    num_sample = 4
    batch = 8

    key = jax.random.PRNGKey(0)
    k_nb, k_sf, k_w, k_ws = jax.random.split(key, 4)

    # Inputs as the torch forward receives them before .view():
    neighbor_feats = jax.random.normal(
        k_nb, (batch * num_sample, in_channels), jnp.float32)
    self_feats = jax.random.normal(k_sf, (batch, in_channels), jnp.float32)
    params = {
        "weight": _glorot(k_w, (in_channels, out_channels)),
        "self_weight": _glorot(k_ws, (in_channels, out_channels)),
    }

    ref = _reference(neighbor_feats, self_feats, num_sample, params)

    # 1) f32 compute, fused (mean-folded-into-matmul) path -- tight tolerance.
    out_f32 = jax.block_until_ready(
        sage_layer(neighbor_feats, self_feats, num_sample, params,
                   compute_dtype=jnp.float32))
    assert out_f32.shape == (batch, 2 * out_channels)
    assert jnp.allclose(out_f32, ref, rtol=1e-4, atol=1e-4), "f32 fused mismatch"

    # 2) default bf16 compute (half the DMA bytes, bf16 MXU path) -- loose tol.
    out_bf16 = jax.block_until_ready(
        sage_layer(neighbor_feats, self_feats, num_sample, params))
    assert out_bf16.shape == (batch, 2 * out_channels)
    assert jnp.allclose(out_bf16, ref, rtol=5e-2, atol=5e-2), "bf16 fused mismatch"

    # 3) general (3-D block) path with a ragged last tile (no wrapper padding).
    batch_r = 20
    nb_r = jax.random.normal(
        k_nb, (batch_r * num_sample, in_channels), jnp.float32)
    sf_r = jax.random.normal(k_sf, (batch_r, in_channels), jnp.float32)
    ref_r = _reference(nb_r, sf_r, num_sample, params)
    out_r = jax.block_until_ready(
        sage_layer(nb_r, sf_r, num_sample, params,
                   compute_dtype=jnp.float32, batch_tile=8, fuse_k_limit=0))
    assert out_r.shape == (batch_r, 2 * out_channels)
    assert jnp.allclose(out_r, ref_r, rtol=1e-4, atol=1e-4), "general/ragged mismatch"

    print("KERNEL_OK")
</pallas_src>

<mosaic_0001>
module attributes {stable_mosaic.version = 11 : i64} {
  func.func @_sage_fused_kernel(%arg0: i32, %arg1: memref<8x64xf32, #tpu.memory_space<vmem>>, %arg2: memref<8x16xf32, #tpu.memory_space<vmem>>, %arg3: memref<64x128xf32, #tpu.memory_space<vmem>>, %arg4: memref<16x128xf32, #tpu.memory_space<vmem>>, %arg5: memref<8x128xf32, #tpu.memory_space<vmem>>) attributes {dimension_semantics = [#tpu.dimension_semantics<parallel>], iteration_bounds = array<i64: 1>, scalar_prefetch = 0 : i64, scratch_operands = 0 : i64, tpu.core_type = #tpu.core_type<tc>, window_params = [{transform_indices = @transform_0, window_bounds = array<i64: 8, 64>}, {transform_indices = @transform_1, window_bounds = array<i64: 8, 16>}, {pipeline_mode = #tpu.pipeline_mode<synchronous>, transform_indices = @transform_2, window_bounds = array<i64: 64, 128>}, {pipeline_mode = #tpu.pipeline_mode<synchronous>, transform_indices = @transform_3, window_bounds = array<i64: 16, 128>}, {transform_indices = @transform_4, window_bounds = array<i64: 8, 128>}]} {
    %c0 = arith.constant 0 : index
    %c0_0 = arith.constant 0 : index
    %0 = vector.load %arg1[%c0, %c0_0] : memref<8x64xf32, #tpu.memory_space<vmem>>, vector<8x64xf32>
    %c0_1 = arith.constant 0 : index
    %c0_2 = arith.constant 0 : index
    %1 = vector.load %arg3[%c0_1, %c0_2] : memref<64x128xf32, #tpu.memory_space<vmem>>, vector<64x128xf32>
    %cst = arith.constant dense<0.000000e+00> : vector<8x128xf32>
    %2 = tpu.matmul %0, %1, %cst {dimension_numbers = #tpu.dot_dimension_numbers<[1], [0], [0], [1], [0, 0, 1, 1], [], []>} : vector<8x64xf32>, vector<64x128xf32>, vector<8x128xf32> -> vector<8x128xf32>
    %c0_3 = arith.constant 0 : index
    %c0_4 = arith.constant 0 : index
    %3 = vector.load %arg2[%c0_3, %c0_4] : memref<8x16xf32, #tpu.memory_space<vmem>>, vector<8x16xf32>
    %c0_5 = arith.constant 0 : index
    %c0_6 = arith.constant 0 : index
    %4 = vector.load %arg4[%c0_5, %c0_6] : memref<16x128xf32, #tpu.memory_space<vmem>>, vector<16x128xf32>
    %cst_7 = arith.constant dense<0.000000e+00> : vector<8x128xf32>
    %5 = tpu.matmul %3, %4, %cst_7 {dimension_numbers = #tpu.dot_dimension_numbers<[1], [0], [0], [1], [0, 0, 1, 1], [], []>} : vector<8x16xf32>, vector<16x128xf32>, vector<8x128xf32> -> vector<8x128xf32>
    %6 = arith.addf %2, %5 : vector<8x128xf32>
    %c0_8 = arith.constant 0 : index
    %c0_9 = arith.constant 0 : index
    %7 = vector.load %arg5[%c0_8, %c0_9] : memref<8x128xf32, #tpu.memory_space<vmem>>, vector<8x128xf32>
    tpu.vector_store %arg5[%c0_8, %c0_9], %6 {strides = array<i32>} : memref<8x128xf32, #tpu.memory_space<vmem>>, vector<8x128xf32>,
    return
  }
  func.func @transform_0(%arg0: i32) -> (i32, i32) {
    %c0_i32 = arith.constant 0 : i32
    %c0_i32_0 = arith.constant 0 : i32
    return %arg0, %c0_i32 : i32, i32
  }
  func.func @transform_1(%arg0: i32) -> (i32, i32) {
    %c0_i32 = arith.constant 0 : i32
    %c0_i32_0 = arith.constant 0 : i32
    return %arg0, %c0_i32 : i32, i32
  }
  func.func @transform_2(%arg0: i32) -> (i32, i32) {
    %c0_i32 = arith.constant 0 : i32
    %c0_i32_0 = arith.constant 0 : i32
    %c0_i32_1 = arith.constant 0 : i32
    return %c0_i32, %c0_i32_0 : i32, i32
  }
  func.func @transform_3(%arg0: i32) -> (i32, i32) {
    %c0_i32 = arith.constant 0 : i32
    %c0_i32_0 = arith.constant 0 : i32
    %c0_i32_1 = arith.constant 0 : i32
    return %c0_i32, %c0_i32_0 : i32, i32
  }
  func.func @transform_4(%arg0: i32) -> (i32, i32) {
    %c0_i32 = arith.constant 0 : i32
    %c0_i32_0 = arith.constant 0 : i32
    return %arg0, %c0_i32 : i32, i32
  }
}

</mosaic_0001>

<bundles_post_ra>
// kernel: tpu_custom_call.1
= control target key start
LH: loop header
LB: loop body
LE: loop exit
PB: predicated region body
PF: predicated region fallthrough
CT: control target
= control target key end

     0   :  { %9 = vsyncpa [#allocation3], 0  ;;  %s341_s0 = inlined_call_operand.hbm [shape: f32[8,64], index: 0, kind: input, shape index: {}]   ;;  %s342_s1 = inlined_call_operand.hbm [shape: f32[8,16], index: 1, kind: input, shape index: {}]   ;;  %s343_s2 = inlined_call_operand.hbm [shape: f32[64,128], index: 2, kind: input, shape index: {}]   ;;  %s344_s3 = inlined_call_operand.hbm [shape: f32[16,128], index: 3, kind: input, shape index: {}]   ;;  %s345_s4 = inlined_call_operand.hbm [shape: f32[8,128], index: 4, kind: output, shape index: {}]  }
   0x1   :  { %10 = vsyncpa [#allocation6], 0 }
   0x2   :  { %11 = vsyncpa [#allocation9], 0  ;;  %s29_s17 = sshll.u32 %s342_s1, 4  ;;  %s30_s17 = int_to_ptr.hbm [resolvable:$true] %s29_s17 }
   0x3   :  { %12 = vsyncpa [#allocation4], 0  ;;  %s294_s18 = smov [#allocation5]   ;;  %s18_s22 = sshll.u32 %s341_s0, 4  ;;  %s19_s22 = int_to_ptr.hbm [resolvable:$true] %s18_s22 }
   0x4   :  { %s31_s19 = sshll.u32 %s294_s18, 4  ;;  %s295_s23 = smov [#allocation2]   ;;  %s32_s19 = int_to_ptr.vmem [resolvable:$true] %s31_s19 }
   0x5   :  { %34 = dma.hbm_to_vmem [thread:$0]  %s30_s17, 128, %s32_s19, [#allocation6]  }
   0x6   :  { %s20_s24 = sshll.u32 %s295_s23, 4  ;;  %s39_s27 = sshll.u32 %s343_s2, 4  ;;  %s21_s24 = int_to_ptr.vmem [resolvable:$true] %s20_s24  ;;  %s40_s27 = int_to_ptr.hbm [resolvable:$true] %s39_s27 }
   0x7   :  { %23 = dma.hbm_to_vmem [thread:$0]  %s19_s22, 128, %s21_s24, [#allocation3]  }
   0x8   :  { %s296_s1 = smov [#allocation7]   ;;  %s52_s5 = sshll.u32 %s344_s3, 4  ;;  %s53_s5 = int_to_ptr.hbm [resolvable:$true] %s52_s5 }
   0x9   :  { %s41_s28 = sshll.u32 %s296_s1, 4  ;;  %s297_s6 = smov 128   ;;  %s42_s28 = int_to_ptr.vmem [resolvable:$true] %s41_s28 }
   0xa   :  { %s298_s0 = smov 8   ;;  %s299_s7 = smov [#allocation8]  }
   0xb   :  { %47 = dma.hbm_to_vmem [thread:$0]  %s40_s27, 1024, %s42_s28, [#allocation6], %s297_s6, %s297_s6, %s298_s0  }
   0xc   :  { %s54_s8 = sshll.u32 %s299_s7, 4  ;;  %s55_s8 = int_to_ptr.vmem [resolvable:$true] %s54_s8 }
   0xd   :  { %60 = dma.hbm_to_vmem [thread:$0]  %s53_s5, 256, %s55_s8, [#allocation9], %s297_s6, %s297_s6, %s298_s0  }
   0xe   :  { %286 = dma.done.wait [#allocation3], 128  }
   0xf   :  { %287 = vsyncadd [#allocation3], 4294967168 }
  0x10   :  { %288 = dma.done.wait [#allocation6], 1152  }
  0x11   :  { %289 = vsyncadd [#allocation6], 4294966144 }
  0x12   :  { %290 = dma.done.wait [#allocation9], 256  }
  0x13   :  { %291 = vsyncadd [#allocation9], 4294967040  ;;  %v85_v0 = vld [vmem:[#allocation7 + $0x38] sm:$0xff]  ;;  %v84_v1 = vld [vmem:[#allocation7 + $0x30] sm:$0xff]  ;;  %vm89_vm0 = vcmask 130048   ;;  %vm113_vm1 = vcmask 523264  }
  0x14   :  { %125 = vmatpush.msra.mxu1 %v85_v0  ;;  %v83_v2 = vld [vmem:[#allocation7 + $0x28] sm:$0xff]  ;;  %v87_v4 = vld [vmem:[#allocation8] sm:$0xff]  ;;  %v86_v5 = vld [vmem:[#allocation5] sm:$0xff]  ;;  %s300_s2 = smov [#allocation10]   ;;  %s145_s11 = sshll.u32 %s345_s4, 4  ;;  %s146_s11 = int_to_ptr.hbm [resolvable:$true] %s145_s11 }
  0x15   :  { %v88_v3 = vld [vmem:[#allocation8 + $0x8] sm:$0xff]  ;;  %v82_v6 = vld [vmem:[#allocation7 + $0x20] sm:$0xff]  ;;  %v81_v7 = vld [vmem:[#allocation7 + $0x18] sm:$0xff]  ;;  %s143_s3 = sshll.u32 %s300_s2, 4  ;;  %s144_s3 = int_to_ptr.vmem [resolvable:$true] %s143_s3 }
  0x16   :  { %126 = vmatpush.msra.mxu1 %v84_v1  ;;  %107 = vmatpush.msra.mxu0 %v88_v3  ;;  %v80_v8 = vld [vmem:[#allocation7 + $0x10] sm:$0xff]  ;;  %v79_v9 = vld [vmem:[#allocation7 + $0x8] sm:$0xff]  ;;  %v78_v10 = vld [vmem:[#allocation7] sm:$0xff] }
  0x17   :  { %v77_v11 = vld [vmem:[#allocation2] sm:$0xff] }
  0x18   :  { %127 = vmatpush.msra.mxu1 %v83_v2  ;;  %108 = vmatpush.msra.mxu0 %v87_v4 }
  0x19   :  { %157 = vmatmul.msk.f32.vlgmr.msra.gmra.mxu0 %vm89_vm0, %v86_v5 }
  0x1a   :  { %128 = vmatpush.msra.mxu1 %v82_v6 }
  0x1c   :  { %129 = vmatpush.msra.mxu1 %v81_v7 }
  0x1e   :  { %130 = vmatpush.msra.mxu1 %v80_v8 }
  0x20   :  { %131 = vmatpush.msra.mxu1 %v79_v9 }
  0x22   :  { %132 = vmatpush.msra.mxu1 %v78_v10 }
  0x23   :  { %158 = vmatmul.msk.f32.vlgmr.msra.gmra.mxu1 %vm113_vm1, %v77_v11 }
  0x96   :  { %v110_v12 = vpop.f32.mrf.mxu0 }
  0xa0   :  { %v134_v13 = vpop.f32.mrf.mxu1 }
  0xa1   :  { %v135_v14 = vadd.f32 %v134_v13, %v110_v12 }
  0xa3   :  { %137 = vst [vmem:[#allocation10] sm:$0xff] %v135_v14 }
  0xa4   :  { %148 = dma.vmem_to_hbm [thread:$0]  %s144_s3, 128, %s146_s11, [#allocation4]  }
  0xa5   :  { %292 = dma.done.wait [#allocation4], 128  }
  0xa6   :  { %293 = vsyncadd [#allocation4], 4294967168 }
  0xa7   :  { %153 = vsyncpa [#allocation3], 1 }
  0xa8   :  { %154 = vsyncpa [#allocation6], 1 }
  0xa9   :  { %155 = vsyncpa [#allocation9], 1 }
  0xaa   :  { %156 = vsyncpa [#allocation4], 1 }

</bundles_post_ra>
